<compile_context>
chip_gen: v5e
topology: v5e:2x2
jax: 0.10.0
libtpu: 0.0.40
codegen_flags: <defaults>
</compile_context>

<pallas_src>
import functools

import jax
import jax.numpy as jnp
from jax.experimental import pallas as pl
from jax.experimental.pallas import tpu as pltpu

EPS = 1e-5
_VMEM_LIMIT = 32 * 1024 * 1024      # safe on v5e/v6e/v7x
_BLOCK_BYTES = 2 * 1024 * 1024      # ~2 MiB per (1, C, TL) buffer


def _choose_chunk(hw, c):
    """Largest multiple-of-128 divisor of hw with C*TL*4B <= _BLOCK_BYTES,
    or hw itself (full row) when hw is small / has no such divisor."""
    max_tl = max(128, _BLOCK_BYTES // (4 * max(c, 1)))
    if hw <= max_tl:
        return hw
    tl = (max_tl // 128) * 128
    while tl >= 128:
        if hw % tl == 0:
            return tl
        tl -= 128
    return hw  # fallback: no aligned divisor; take the whole row


def _stats_kernel(x_ref, s_ref, ss_ref):
    """Accumulate per-(n, c) sum and sum-of-squares over H*W chunks."""
    @pl.when(pl.program_id(1) == 0)
    def _():
        s_ref[...] = jnp.zeros_like(s_ref)
        ss_ref[...] = jnp.zeros_like(ss_ref)

    x = x_ref[...].astype(jnp.float32)                    # (1, C, TL)
    s_ref[...] += jnp.sum(x, axis=-1, keepdims=True)      # (1, C, 1)
    ss_ref[...] += jnp.sum(x * x, axis=-1, keepdims=True)


def _normalize_kernel(x_ref, scale_ref, shift_ref, o_ref):
    """y = x * scale + shift with per-(n, c) scale/shift (gamma/beta folded)."""
    x = x_ref[...].astype(jnp.float32)                    # (1, C, TL)
    y = x * scale_ref[...] + shift_ref[...]               # scale/shift: (1, C, 1)
    o_ref[...] = y.astype(o_ref.dtype)


@functools.partial(jax.jit, static_argnames=("half",))
def ibn_forward(x, in_w, in_b, bn_w, bn_b, half):
    """x: (N, C, H, W).  Returns (N, C, H, W)."""
    N, C, H, W = x.shape
    HW = H * W
    c_bn = C - half
    x3 = x.reshape(N, C, HW)

    TL = _choose_chunk(HW, C)
    K = HW // TL

    # ---- Pass 1: one-pass per-(n, c) sum / sumsq in native layout ----
    sum_nc, sumsq_nc = pl.pallas_call(
        _stats_kernel,
        out_shape=(jax.ShapeDtypeStruct((N, C, 1), jnp.float32),
                   jax.ShapeDtypeStruct((N, C, 1), jnp.float32)),
        grid=(N, K),
        in_specs=[pl.BlockSpec((1, C, TL), lambda n, k: (n, 0, k))],
        out_specs=(pl.BlockSpec((1, C, 1), lambda n, k: (n, 0, 0)),
                   pl.BlockSpec((1, C, 1), lambda n, k: (n, 0, 0))),
        compiler_params=pltpu.CompilerParams(
            dimension_semantics=("parallel", "arbitrary"),
            vmem_limit_bytes=_VMEM_LIMIT),
    )(x3)

    # ---- Tiny per-(n, c) scale/shift math (N*C scalars) in plain JAX ----
    s = sum_nc[..., 0].astype(jnp.float32)     # (N, C)
    ss = sumsq_nc[..., 0].astype(jnp.float32)  # (N, C)

    # InstanceNorm half: stats per (n, c) over H*W (biased variance).
    mean_in = s[:, :half] / HW
    var_in = jnp.maximum(ss[:, :half] / HW - mean_in * mean_in, 0.0)
    scale_in = in_w[None, :].astype(jnp.float32) * jax.lax.rsqrt(var_in + EPS)
    shift_in = in_b[None, :].astype(jnp.float32) - mean_in * scale_in

    # BatchNorm half: batch stats per channel over N*H*W (biased variance).
    cnt = N * HW
    mean_bn = jnp.sum(s[:, half:], axis=0) / cnt
    var_bn = jnp.maximum(jnp.sum(ss[:, half:], axis=0) / cnt - mean_bn * mean_bn, 0.0)
    scale_bn = bn_w.astype(jnp.float32) * jax.lax.rsqrt(var_bn + EPS)
    shift_bn = bn_b.astype(jnp.float32) - mean_bn * scale_bn
    scale_bn = jnp.broadcast_to(scale_bn[None, :], (N, c_bn))
    shift_bn = jnp.broadcast_to(shift_bn[None, :], (N, c_bn))

    scale = jnp.concatenate([scale_in, scale_bn], axis=1).reshape(N, C, 1)
    shift = jnp.concatenate([shift_in, shift_bn], axis=1).reshape(N, C, 1)

    # ---- Pass 2: fused normalize writing the full output (no concat) ----
    out = pl.pallas_call(
        _normalize_kernel,
        out_shape=jax.ShapeDtypeStruct((N, C, HW), x.dtype),
        grid=(N, K),
        in_specs=[
            pl.BlockSpec((1, C, TL), lambda n, k: (n, 0, k)),
            pl.BlockSpec((1, C, 1), lambda n, k: (n, 0, 0)),
            pl.BlockSpec((1, C, 1), lambda n, k: (n, 0, 0)),
        ],
        out_specs=pl.BlockSpec((1, C, TL), lambda n, k: (n, 0, k)),
        compiler_params=pltpu.CompilerParams(
            dimension_semantics=("parallel", "parallel"),
            vmem_limit_bytes=_VMEM_LIMIT),
    )(x3, scale, shift)

    return out.reshape(N, C, H, W)


def _reference(x, in_w, in_b, bn_w, bn_b, half):
    """Pure-JAX reference mirroring PyTorch IBN forward (training mode)."""
    x_in = x[:, :half]
    mu = jnp.mean(x_in, axis=(2, 3), keepdims=True)
    var = jnp.mean((x_in - mu) ** 2, axis=(2, 3), keepdims=True)
    o1 = (x_in - mu) * jax.lax.rsqrt(var + EPS)
    o1 = o1 * in_w[None, :, None, None] + in_b[None, :, None, None]

    x_bn = x[:, half:]
    mu = jnp.mean(x_bn, axis=(0, 2, 3), keepdims=True)
    var = jnp.mean((x_bn - mu) ** 2, axis=(0, 2, 3), keepdims=True)
    o2 = (x_bn - mu) * jax.lax.rsqrt(var + EPS)
    o2 = o2 * bn_w[None, :, None, None] + bn_b[None, :, None, None]
    return jnp.concatenate([o1, o2], axis=1)


if __name__ == "__main__":
    # Small shapes consistent with the module: planes=4, ratio=0.5 -> half=2.
    N, C, H, W = 2, 4, 16, 16
    planes, ratio = C, 0.5
    half = int(planes * ratio)

    key = jax.random.PRNGKey(0)
    kx, k1, k2, k3, k4 = jax.random.split(key, 5)
    x = jax.random.normal(kx, (N, C, H, W), dtype=jnp.float32)

    in_w = 1.0 + 0.1 * jax.random.normal(k1, (half,), dtype=jnp.float32)
    in_b = 0.1 * jax.random.normal(k2, (half,), dtype=jnp.float32)
    bn_w = 1.0 + 0.1 * jax.random.normal(k3, (planes - half,), dtype=jnp.float32)
    bn_b = 0.1 * jax.random.normal(k4, (planes - half,), dtype=jnp.float32)

    out = ibn_forward(x, in_w, in_b, bn_w, bn_b, half)
    out = jax.block_until_ready(out)

    ref = _reference(x, in_w, in_b, bn_w, bn_b, half)
    assert out.shape == (N, C, H, W)
    assert jnp.allclose(out, ref, atol=1e-4, rtol=1e-4), "mismatch vs reference"

    print("KERNEL_OK")
</pallas_src>

<mosaic_0001>
module attributes {stable_mosaic.version = 11 : i64} {
  func.func @_stats_kernel(%arg0: i32, %arg1: i32, %arg2: memref<1x4x256xf32, #tpu.memory_space<vmem>>, %arg3: memref<1x4x1xf32, #tpu.memory_space<vmem>>, %arg4: memref<1x4x1xf32, #tpu.memory_space<vmem>>) attributes {dimension_semantics = [#tpu.dimension_semantics<parallel>, #tpu.dimension_semantics<arbitrary>], iteration_bounds = array<i64: 2, 1>, scalar_prefetch = 0 : i64, scratch_operands = 0 : i64, tpu.core_type = #tpu.core_type<tc>, window_params = [{transform_indices = @transform_0, window_bounds = array<i64: 1, 4, 256>}, {transform_indices = @transform_1, window_bounds = array<i64: 1, 4, 1>}, {transform_indices = @transform_2, window_bounds = array<i64: 1, 4, 1>}]} {
    %c0_i32 = arith.constant 0 : i32
    %0 = arith.cmpi eq, %arg1, %c0_i32 : i32
    %1 = arith.extui %0 : i1 to i32
    %c0_i32_0 = arith.constant 0 : i32
    %2 = arith.cmpi ne, %1, %c0_i32_0 : i32
    scf.if %2 {
      %cst_16 = arith.constant 0.000000e+00 : f32
      %15 = vector.broadcast %cst_16 : f32 to vector<1x4x1xf32>
      %c0_17 = arith.constant 0 : index
      %c0_18 = arith.constant 0 : index
      %c0_19 = arith.constant 0 : index
      %16 = vector.load %arg3[%c0_17, %c0_18, %c0_19] : memref<1x4x1xf32, #tpu.memory_space<vmem>>, vector<1x4x1xf32>
      tpu.vector_store %arg3[%c0_17, %c0_18, %c0_19], %15 {strides = array<i32>} : memref<1x4x1xf32, #tpu.memory_space<vmem>>, vector<1x4x1xf32>,
      %cst_20 = arith.constant 0.000000e+00 : f32
      %17 = vector.broadcast %cst_20 : f32 to vector<1x4x1xf32>
      %c0_21 = arith.constant 0 : index
      %c0_22 = arith.constant 0 : index
      %c0_23 = arith.constant 0 : index
      %18 = vector.load %arg4[%c0_21, %c0_22, %c0_23] : memref<1x4x1xf32, #tpu.memory_space<vmem>>, vector<1x4x1xf32>
      tpu.vector_store %arg4[%c0_21, %c0_22, %c0_23], %17 {strides = array<i32>} : memref<1x4x1xf32, #tpu.memory_space<vmem>>, vector<1x4x1xf32>,
    } else {
    }
    %c0 = arith.constant 0 : index
    %c0_1 = arith.constant 0 : index
    %c0_2 = arith.constant 0 : index
    %3 = vector.load %arg2[%c0, %c0_1, %c0_2] : memref<1x4x256xf32, #tpu.memory_space<vmem>>, vector<1x4x256xf32>
    %c0_3 = arith.constant 0 : index
    %c0_4 = arith.constant 0 : index
    %c0_5 = arith.constant 0 : index
    %4 = vector.load %arg3[%c0_3, %c0_4, %c0_5] : memref<1x4x1xf32, #tpu.memory_space<vmem>>, vector<1x4x1xf32>
    %cst = arith.constant dense<0.000000e+00> : vector<1x4xf32>
    %5 = vector.multi_reduction <add>, %3, %cst [2] : vector<1x4x256xf32> to vector<1x4xf32>
    %6 = vector.shape_cast %5 : vector<1x4xf32> to vector<1x4x1xf32>
    %7 = arith.addf %4, %6 : vector<1x4x1xf32>
    %c0_6 = arith.constant 0 : index
    %c0_7 = arith.constant 0 : index
    %c0_8 = arith.constant 0 : index
    %8 = vector.load %arg3[%c0_6, %c0_7, %c0_8] : memref<1x4x1xf32, #tpu.memory_space<vmem>>, vector<1x4x1xf32>
    tpu.vector_store %arg3[%c0_6, %c0_7, %c0_8], %7 {strides = array<i32>} : memref<1x4x1xf32, #tpu.memory_space<vmem>>, vector<1x4x1xf32>,
    %c0_9 = arith.constant 0 : index
    %c0_10 = arith.constant 0 : index
    %c0_11 = arith.constant 0 : index
    %9 = vector.load %arg4[%c0_9, %c0_10, %c0_11] : memref<1x4x1xf32, #tpu.memory_space<vmem>>, vector<1x4x1xf32>
    %10 = arith.mulf %3, %3 : vector<1x4x256xf32>
    %cst_12 = arith.constant dense<0.000000e+00> : vector<1x4xf32>
    %11 = vector.multi_reduction <add>, %10, %cst_12 [2] : vector<1x4x256xf32> to vector<1x4xf32>
    %12 = vector.shape_cast %11 : vector<1x4xf32> to vector<1x4x1xf32>
    %13 = arith.addf %9, %12 : vector<1x4x1xf32>
    %c0_13 = arith.constant 0 : index
    %c0_14 = arith.constant 0 : index
    %c0_15 = arith.constant 0 : index
    %14 = vector.load %arg4[%c0_13, %c0_14, %c0_15] : memref<1x4x1xf32, #tpu.memory_space<vmem>>, vector<1x4x1xf32>
    tpu.vector_store %arg4[%c0_13, %c0_14, %c0_15], %13 {strides = array<i32>} : memref<1x4x1xf32, #tpu.memory_space<vmem>>, vector<1x4x1xf32>,
    return
  }
  func.func @transform_0(%arg0: i32, %arg1: i32) -> (i32, i32, i32) {
    %c0_i32 = arith.constant 0 : i32
    %c0_i32_0 = arith.constant 0 : i32
    return %arg0, %c0_i32, %arg1 : i32, i32, i32
  }
  func.func @transform_1(%arg0: i32, %arg1: i32) -> (i32, i32, i32) {
    %c0_i32 = arith.constant 0 : i32
    %c0_i32_0 = arith.constant 0 : i32
    %c0_i32_1 = arith.constant 0 : i32
    return %arg0, %c0_i32, %c0_i32_0 : i32, i32, i32
  }
  func.func @transform_2(%arg0: i32, %arg1: i32) -> (i32, i32, i32) {
    %c0_i32 = arith.constant 0 : i32
    %c0_i32_0 = arith.constant 0 : i32
    %c0_i32_1 = arith.constant 0 : i32
    return %arg0, %c0_i32, %c0_i32_0 : i32, i32, i32
  }
}

module attributes {stable_mosaic.version = 11 : i64} {
  func.func @_normalize_kernel(%arg0: i32, %arg1: i32, %arg2: memref<1x4x256xf32, #tpu.memory_space<vmem>>, %arg3: memref<1x4x1xf32, #tpu.memory_space<vmem>>, %arg4: memref<1x4x1xf32, #tpu.memory_space<vmem>>, %arg5: memref<1x4x256xf32, #tpu.memory_space<vmem>>) attributes {dimension_semantics = [#tpu.dimension_semantics<parallel>, #tpu.dimension_semantics<parallel>], iteration_bounds = array<i64: 2, 1>, scalar_prefetch = 0 : i64, scratch_operands = 0 : i64, tpu.core_type = #tpu.core_type<tc>, window_params = [{transform_indices = @transform_0, window_bounds = array<i64: 1, 4, 256>}, {transform_indices = @transform_1, window_bounds = array<i64: 1, 4, 1>}, {transform_indices = @transform_2, window_bounds = array<i64: 1, 4, 1>}, {transform_indices = @transform_3, window_bounds = array<i64: 1, 4, 256>}]} {
    %c0 = arith.constant 0 : index
    %c0_0 = arith.constant 0 : index
    %c0_1 = arith.constant 0 : index
    %0 = vector.load %arg2[%c0, %c0_0, %c0_1] : memref<1x4x256xf32, #tpu.memory_space<vmem>>, vector<1x4x256xf32>
    %c0_2 = arith.constant 0 : index
    %c0_3 = arith.constant 0 : index
    %c0_4 = arith.constant 0 : index
    %1 = vector.load %arg3[%c0_2, %c0_3, %c0_4] : memref<1x4x1xf32, #tpu.memory_space<vmem>>, vector<1x4x1xf32>
    %2 = vector.broadcast %1 : vector<1x4x1xf32> to vector<1x4x256xf32>
    %3 = arith.mulf %0, %2 : vector<1x4x256xf32>
    %c0_5 = arith.constant 0 : index
    %c0_6 = arith.constant 0 : index
    %c0_7 = arith.constant 0 : index
    %4 = vector.load %arg4[%c0_5, %c0_6, %c0_7] : memref<1x4x1xf32, #tpu.memory_space<vmem>>, vector<1x4x1xf32>
    %5 = vector.broadcast %4 : vector<1x4x1xf32> to vector<1x4x256xf32>
    %6 = arith.addf %3, %5 : vector<1x4x256xf32>
    %c0_8 = arith.constant 0 : index
    %c0_9 = arith.constant 0 : index
    %c0_10 = arith.constant 0 : index
    %7 = vector.load %arg5[%c0_8, %c0_9, %c0_10] : memref<1x4x256xf32, #tpu.memory_space<vmem>>, vector<1x4x256xf32>
    tpu.vector_store %arg5[%c0_8, %c0_9, %c0_10], %6 {strides = array<i32>} : memref<1x4x256xf32, #tpu.memory_space<vmem>>, vector<1x4x256xf32>,
    return
  }
  func.func @transform_0(%arg0: i32, %arg1: i32) -> (i32, i32, i32) {
    %c0_i32 = arith.constant 0 : i32
    %c0_i32_0 = arith.constant 0 : i32
    return %arg0, %c0_i32, %arg1 : i32, i32, i32
  }
  func.func @transform_1(%arg0: i32, %arg1: i32) -> (i32, i32, i32) {
    %c0_i32 = arith.constant 0 : i32
    %c0_i32_0 = arith.constant 0 : i32
    %c0_i32_1 = arith.constant 0 : i32
    return %arg0, %c0_i32, %c0_i32_0 : i32, i32, i32
  }
  func.func @transform_2(%arg0: i32, %arg1: i32) -> (i32, i32, i32) {
    %c0_i32 = arith.constant 0 : i32
    %c0_i32_0 = arith.constant 0 : i32
    %c0_i32_1 = arith.constant 0 : i32
    return %arg0, %c0_i32, %c0_i32_0 : i32, i32, i32
  }
  func.func @transform_3(%arg0: i32, %arg1: i32) -> (i32, i32, i32) {
    %c0_i32 = arith.constant 0 : i32
    %c0_i32_0 = arith.constant 0 : i32
    return %arg0, %c0_i32, %arg1 : i32, i32, i32
  }
}

</mosaic_0001>

<bundles_post_ra>
// kernel: ibn_forward.2
= control target key start
LH: loop header
LB: loop body
LE: loop exit
PB: predicated region body
PF: predicated region fallthrough
CT: control target
= control target key end

     0   :  { %s395_s9 = smov 0   ;;  %s397_s10 = smov 0   ;;  %s435_s0 = inlined_call_operand.vmem [shape: f32[2,4,256], index: 0, kind: input, shape index: {}]   ;;  %s436_s1 = inlined_call_operand.vmem [shape: f32[2,4,1], index: 1, kind: output, shape index: {0}]   ;;  %s437_s2 = inlined_call_operand.vmem [shape: f32[2,4,1], index: 2, kind: output, shape index: {1}]  }
   0x1   :  { %s399_s11 = smov 0  }
   0x2 LB: > { %s25_s12 = sadd.s32 1, %s373_s10  ;;  %p322_p0 = scmp.ge.s32.totalorder %s377_s11, 1  ;;  %s377_s11 = sphi %s399_s11, %s13_s11   ;;  %s373_s10 = sphi %s397_s10, %s439_s10   ;;  %s369_s9 = sphi %s395_s9, %s438_s9  }
   0x3   : > { %p27_p1 = scmp.ge.s32.totalorder %s25_s12, 2  ;;  %p134_p2 = scmp.lt.s32.totalorder %s377_s11, 3 }
   0x5   : > { %s441_s12 = smov (%p27_p1, %s25_s12), 0  ;;  %p135_p3 = pnand %p322_p0, %p134_p2 }
   0x6   : > { %p164_p4 = scmp.lt.s32.totalorder (!%p135_p3), %s369_s9, 1 }
   0x7   : > { %138 = sbr.rel (%p135_p3) target bundleno = 154 (0x9a), region = 24 }
   0xc   : > { %s443_s9 = smov (!%p164_p4, %s369_s9), 1  ;;  %vm185_vm0 = vcmask 3072   ;;  %v379_v1 = vmov 0.0   ;;  %vm196_vm1 = vcmask 1043456  }
   0xd   : > { %s329_s13 = sshll.u32 %s443_s9, 3  ;;  %s325_s14 = sshll.u32 %s443_s9, 2 }
   0xe   : > { %s171_s17 = scalar_lea.vmem %s435_s0, %s329_s13  ;;  %s176_s20 = scalar_lea.vmem %s436_s1, %s325_s14 }
   0xf   : > { %v188_v0 = vld [vmem:[%s171_s17] sm:$0xff]  ;;  %186 = vst.msk [vmem:[%s176_s20] sm:$0xf] %vm185_vm0, %v379_v1  ;;  %s180_s23 = scalar_lea.vmem %s437_s2, %s325_s14 }
  0x10   : > { %191 = vst [vmem:[#allocation1] ss:$2 sm:$0xff] %v188_v0  ;;  %v206_v2 = vmul.f32 %v188_v0, %v188_v0 }
  0x11   : > { %187 = vst.msk [vmem:[%s180_s23] sm:$0xf] %vm185_vm0, %v379_v1 }
  0x16   : > { %v189_v13 = vld [vmem:[%s176_s20] sm:$0xf] }
  0x17   : > { %v192_v3 = vld.sshfl [vmem:[#allocation1] sm:$0xff pattern:$0x75316420]  ;;  %v193_v4 = vld.sshfl [vmem:[#allocation1 + $0x8] sm:$0xff pattern:$0x75316420] }
  0x18   : > { %v197_v5 = vsel %vm196_vm1, %v192_v3, 0.0  ;;  %v198_v6 = vsel %vm196_vm1, %v193_v4, 0.0  ;;  %208 = vst [vmem:[#allocation1] ss:$2 sm:$0xff] %v206_v2  ;;  %v205_v16 = vld [vmem:[%s180_s23] sm:$0xf] }
  0x19   : > { %v199_v7 = vadd.f32 %v198_v6, %v197_v5 }
  0x1b   : > { %200 = vadd.xlane.f32.xlu0 %v199_v7 }
  0x1f   : > { %v209_v8 = vld.sshfl [vmem:[#allocation1] sm:$0xff pattern:$0x75316420]  ;;  %v210_v9 = vld.sshfl [vmem:[#allocation1 + $0x8] sm:$0xff pattern:$0x75316420] }
  0x20   : > { %v213_v10 = vsel %vm196_vm1, %v209_v8, 0.0  ;;  %v214_v11 = vsel %vm196_vm1, %v210_v9, 0.0 }
  0x21   : > { %v215_v12 = vadd.f32 %v214_v11, %v213_v10 }
  0x23   : > { %216 = vadd.xlane.f32.xlu0 %v215_v12 }
  0x8e   : > { %v201_v14 = vpop.xlane.xlu0 %200 }
  0x8f   : > { %v202_v15 = vadd.f32 %v201_v14, %v189_v13 }
  0x91   : > { %204 = vst.msk [vmem:[%s176_s20] sm:$0xf] %vm185_vm0, %v202_v15 }
  0x96   : > { %v217_v17 = vpop.xlane.xlu0 %216 }
  0x97   : > { %v218_v18 = vadd.f32 %v217_v17, %v205_v16 }
  0x99   : > { %219 = vst.msk [vmem:[%s180_s23] sm:$0xf] %vm185_vm0, %v218_v18 }
  0x9a PF: > { %s13_s11 = sadd.s32 1, %s377_s11   ;;  %s438_s9 = smov %s373_s10 }
  0x9b   : > { %p10_p5 = scmp.ge.s32.totalorder %s13_s11, 4   ;;  %s439_s10 = smov %s441_s12 }
  0x9d   :  { %12 = sbr.rel (!%p10_p5) target bundleno = 2 (0x2), region = 70 }

// kernel: ibn_forward.3
= control target key start
LH: loop header
LB: loop body
LE: loop exit
PB: predicated region body
PF: predicated region fallthrough
CT: control target
= control target key end

     0   :  { %s467_s12 = smov 0   ;;  %s469_s13 = smov 0   ;;  %s506_s0 = inlined_call_operand.vmem [shape: f32[2,4,256], index: 0, kind: input, shape index: {}]   ;;  %s507_s1 = inlined_call_operand.vmem [shape: f32[2,4,1], index: 1, kind: input, shape index: {}]   ;;  %s508_s2 = inlined_call_operand.vmem [shape: f32[2,4,1], index: 2, kind: input, shape index: {}]   ;;  %s509_s3 = inlined_call_operand.vmem [shape: f32[2,4,256], index: 3, kind: output, shape index: {}]  }
   0x1   :  { %s471_s14 = smov 0  }
   0x2 LB: > { %s25_s15 = sadd.s32 1, %s439_s13  ;;  %p383_p0 = scmp.ge.s32.totalorder %s443_s14, 1  ;;  %s443_s14 = sphi %s471_s14, %s13_s14   ;;  %s439_s13 = sphi %s469_s13, %s511_s13   ;;  %s435_s12 = sphi %s467_s12, %s510_s12  }
   0x3   : > { %p27_p1 = scmp.ge.s32.totalorder %s25_s15, 2  ;;  %p176_p2 = scmp.lt.s32.totalorder %s443_s14, 3 }
   0x5   : > { %s513_s15 = smov (%p27_p1, %s25_s15), 0  ;;  %p177_p3 = pnand %p383_p0, %p176_p2 }
   0x6   : > { %p217_p4 = scmp.lt.s32.totalorder (!%p177_p3), %s435_s12, 1 }
   0x7   : > { %180 = sbr.rel (%p177_p3) target bundleno = 144 (0x90), region = 32 }
   0xc   : > { %v445_v0 = vmov 0   ;;  %s515_s12 = smov (!%p217_p4, %s435_s12), 1  ;;  %v446_v3 = vmov 839922192  }
   0xd   : > { %420 = vset.pattern.permute.xlu0 %v445_v0  ;;  %s386_s16 = sshll.u32 %s515_s12, 2  ;;  %v251_v4 = vunpack.c.l.s4 %v446_v3  ;;  %s392_s23 = sshll.u32 %s515_s12, 3 }
   0xe   : > { %s229_s19 = scalar_lea.vmem %s507_s1, %s386_s16  ;;  %s233_s22 = scalar_lea.vmem %s508_s2, %s386_s16 }
   0xf   : > { %v245_v1 = vld [vmem:[%s229_s19] sm:$0xf]  ;;  %v252_v6 = vunpack.c.0.s8 %v251_v4  ;;  %s224_s26 = scalar_lea.vmem %s506_s0, %s392_s23  ;;  %s242_s29 = scalar_lea.vmem %s509_s3, %s392_s23 }
  0x10   : > { %248 = vperm.xlu0 %420, %v245_v1   ;;  %v256_v2 = vld [vmem:[%s233_s22] sm:$0xf] }
  0x11   : > { %v244_v8 = vld [vmem:[%s224_s26] sm:$0xff] }
  0x18   : > { %259 = vperm.xlu0 %420, %v256_v2  }
  0x82   : > { %v249_v5 = vpop.permute.xlu0 %248 }
  0x83   : > { %v253_v7 = vperm.slane %v249_v5, %v252_v6 }
  0x85   : > { %v255_v10 = vmul.f32 %v253_v7, %v244_v8 }
  0x8a   : > { %v260_v9 = vpop.permute.xlu0 %259 }
  0x8b   : > { %v264_v11 = vperm.slane %v260_v9, %v252_v6 }
  0x8d   : > { %v266_v12 = vadd.f32 %v264_v11, %v255_v10 }
  0x8f   : > { %267 = vst [vmem:[%s242_s29] sm:$0xff] %v266_v12 }
  0x90 PF: > { %s13_s14 = sadd.s32 1, %s443_s14   ;;  %s510_s12 = smov %s439_s13 }
  0x91   : > { %p10_p5 = scmp.ge.s32.totalorder %s13_s14, 4   ;;  %s511_s13 = smov %s513_s15 }
  0x93   :  { %12 = sbr.rel (!%p10_p5) target bundleno = 2 (0x2), region = 68 }

</bundles_post_ra>
